<compile_context>
chip_gen: v7x
topology: tpu7x:2x2x1
jax: 0.10.0
libtpu: 0.0.40
codegen_flags: <defaults>
</compile_context>

<pallas_src>
import jax
import jax.numpy as jnp
from jax import lax
from jax.experimental import pallas as pl
from jax.experimental.pallas import tpu as pltpu


def _round_up(x, m):
    return ((x + m - 1) // m) * m


def _affine_kernel(y_ref, scale_ref, bias_ref, o_ref):
    """Pass 2: pure VPU affine on the stored conv tile (folded BN)."""
    o_ref[0] = y_ref[0].astype(jnp.float32) * scale_ref[...] + bias_ref[...]


def cb_forward(x_nchw, weight_oihw, gamma, beta, *, stride=1, eps=1e-3):
    N, Cin, H, W = x_nchw.shape
    Cout, Cin_w, kH, kW = weight_oihw.shape
    assert Cin_w == Cin and kH == kW
    k = kH
    p = (k - 1) // 2
    s = stride
    Ho = (H + 2 * p - k) // s + 1
    Wo = (W + 2 * p - k) // s + 1
    Hp, Wp = H + 2 * p, W + 2 * p

    # Dense (stride-1) evaluation grid on the padded image, flattened so a conv
    # tap (kh, kw) is a constant lane shift of kh*Wp + kw.  Valid outputs live
    # at rows/cols that are multiples of the stride; everything else is garbage
    # that is masked out of the BN statistics and sliced away at the very end.
    # TODO(synk): stride > 1 takes this dense path (s^2 wasted conv work); a
    # space-to-batch pre-pass would remove that if strided CBs become hot.
    Hgrid = (Ho - 1) * s + 1
    Lz_needed = Hgrid * Wp
    halo = (k - 1) * (Wp + 1)                       # max tap offset
    halo_pad = max(128, _round_up(halo, 128))       # lane-aligned halo block
    t_target = 2048                                  # lanes per grid step
    t_hw = min(_round_up(Lz_needed, halo_pad), _round_up(t_target, halo_pad))
    T = pl.cdiv(Lz_needed, t_hw)
    Lz = T * t_hw                                    # padded dense-grid length
    Lxp = Lz + halo_pad                              # padded flat input length

    # Padded input, flattened channel-major (spatial on lanes), bf16 for the MXU.
    xp = jnp.pad(x_nchw, ((0, 0), (0, 0), (p, p), (p, p))).astype(jnp.bfloat16)
    xflat = xp.reshape(N, Cin, Hp * Wp)
    if Lxp >= Hp * Wp:
        xflat = jnp.pad(xflat, ((0, 0), (0, 0), (0, Lxp - Hp * Wp)))
    else:
        xflat = xflat[:, :, :Lxp]       # tail rows beyond Lxp are never read

    # Per-tap weights (k*k, Cout, Cin), bf16.
    w_taps = jnp.transpose(weight_oihw, (2, 3, 0, 1)).reshape(k * k, Cout, Cin)
    w_taps = w_taps.astype(jnp.bfloat16)

    # Validity mask over the dense grid (1.0 = real strided output position).
    pz = jnp.arange(Lz, dtype=jnp.int32)
    row, col = pz // Wp, pz % Wp
    valid = ((row % s == 0) & (col % s == 0)
             & (row // s < Ho) & (col // s < Wo))
    mask = valid.astype(jnp.bfloat16).reshape(1, Lz)

    def conv_stats_kernel(x0_ref, x1_ref, w_ref, m_ref, y_ref, ssum_ref, ssq_ref):
        """Pass 1: in-VMEM tap extraction + k*k MXU matmuls; emits the conv tile
        (bf16, lane-dense) and accumulates masked per-channel sum / sum-sq."""
        t = pl.program_id(1)
        # Current tile plus halo (both lane-128 multiples) -> resident window.
        x_win = jnp.concatenate([x0_ref[0], x1_ref[0]], axis=-1)  # (Cin, t_hw+halo_pad)
        acc = jnp.zeros((Cout, t_hw), jnp.float32)
        for kh in range(k):
            for kw in range(k):
                off = kh * Wp + kw                                # static lane shift
                acc = acc + jnp.dot(w_ref[kh * k + kw],
                                    x_win[:, off:off + t_hw],
                                    preferred_element_type=jnp.float32)
        y_ref[0] = acc.astype(y_ref.dtype)                        # lane-dense bf16 store
        ym = acc * m_ref[...].astype(jnp.float32)                 # zero garbage positions

        @pl.when(t == 0)
        def _():
            ssum_ref[0] = jnp.zeros((Cout, 1), jnp.float32)
            ssq_ref[0] = jnp.zeros((Cout, 1), jnp.float32)
        ssum_ref[0] += jnp.sum(ym, axis=-1, keepdims=True)
        ssq_ref[0] += jnp.sum(ym * acc, axis=-1, keepdims=True)

    grid = (N, T)
    hstep = t_hw // halo_pad
    x0_spec = pl.BlockSpec((1, Cin, t_hw), lambda n, t: (n, 0, t))
    x1_spec = pl.BlockSpec((1, Cin, halo_pad), lambda n, t: (n, 0, (t + 1) * hstep))
    w_spec = pl.BlockSpec((k * k, Cout, Cin), lambda n, t: (0, 0, 0))
    m_spec = pl.BlockSpec((1, t_hw), lambda n, t: (0, t))
    y_spec = pl.BlockSpec((1, Cout, t_hw), lambda n, t: (n, 0, t))
    stat_spec = pl.BlockSpec((1, Cout, 1), lambda n, t: (n, 0, 0))

    kkc = k * k * Cin
    cost1 = pl.CostEstimate(
        flops=2 * N * Lz * Cout * kkc,
        transcendentals=0,
        bytes_accessed=(N * (Cin * (Lz + T * halo_pad) * 2 + Lz * 2
                             + Cout * Lz * 2 + Cout * 8)
                        + k * k * Cout * Cin * 2))

    # Pass 1: conv + batch statistics (n parallel, hw-tile axis is the
    # stats-accumulation axis).
    y_dense, ssum, ssq = pl.pallas_call(
        conv_stats_kernel,
        out_shape=(jax.ShapeDtypeStruct((N, Cout, Lz), jnp.bfloat16),
                   jax.ShapeDtypeStruct((N, Cout, 1), jnp.float32),
                   jax.ShapeDtypeStruct((N, Cout, 1), jnp.float32)),
        grid_spec=pltpu.PrefetchScalarGridSpec(
            num_scalar_prefetch=0,
            grid=grid,
            in_specs=[x0_spec, x1_spec, w_spec, m_spec],
            out_specs=(y_spec, stat_spec, stat_spec)),
        compiler_params=pltpu.CompilerParams(
            dimension_semantics=("parallel", "arbitrary"),
            vmem_limit_bytes=32 * 1024 * 1024),
        cost_estimate=cost1,
    )(xflat, xflat, w_taps, mask)

    # Tiny XLA epilogue: reduce per-batch sums and fold training-mode BN (biased
    # batch variance) into a per-channel scale / bias.
    count = float(N * Ho * Wo)
    mean = jnp.sum(ssum, axis=0)[:, 0] / count
    var = jnp.maximum(jnp.sum(ssq, axis=0)[:, 0] / count - mean * mean, 0.0)
    # TODO(synk): E[x^2]-E[x]^2 can cancel for large-mean activations; switch to a
    # shifted / two-pass variance if that regime matters.
    # TODO(synk): nn.BatchNorm2d running_mean/running_var (momentum, unbiased var)
    # are module state and are not produced by this functional kernel.
    scale = (gamma.astype(jnp.float32) * lax.rsqrt(var + eps)).reshape(Cout, 1)
    bias = (beta.astype(jnp.float32) - mean * scale[:, 0]).reshape(Cout, 1)

    cost2 = pl.CostEstimate(
        flops=2 * N * Lz * Cout,
        transcendentals=0,
        bytes_accessed=N * Cout * Lz * (2 + 4) + 2 * Cout * 4)

    # Pass 2: pure VPU affine on the stored conv output (no patch/weight re-read,
    # no MXU).  Output stays f32 to match the module's dtype; use bf16 here if a
    # downstream consumer accepts it (v5e store-slot / bandwidth win).
    out_dense = pl.pallas_call(
        _affine_kernel,
        out_shape=jax.ShapeDtypeStruct((N, Cout, Lz), jnp.float32),
        grid_spec=pltpu.PrefetchScalarGridSpec(
            num_scalar_prefetch=0,
            grid=grid,
            in_specs=[y_spec,
                      pl.BlockSpec((Cout, 1), lambda n, t: (0, 0)),
                      pl.BlockSpec((Cout, 1), lambda n, t: (0, 0))],
            out_specs=y_spec),
        compiler_params=pltpu.CompilerParams(
            dimension_semantics=("parallel", "parallel"),
            vmem_limit_bytes=32 * 1024 * 1024),
        cost_estimate=cost2,
    )(y_dense, scale, bias)

    # XLA glue: drop the dense-grid garbage (padding columns / non-strided
    # positions) and return NCHW.
    zz = out_dense[:, :, :Hgrid * Wp].reshape(N, Cout, Hgrid, Wp)
    return zz[:, :, ::s, ::s][:, :, :Ho, :Wo]


def cb_reference(x_nchw, weight_oihw, gamma, beta, *, stride=1, eps=1e-3,
                 input_dtype=jnp.float32):
    """Pure-JAX CB reference (training-mode BN).  `input_dtype` mirrors the
    kernel's bf16 input quantization for a tight comparison."""
    xc = x_nchw.astype(input_dtype).astype(jnp.float32)
    wc = weight_oihw.astype(input_dtype).astype(jnp.float32)
    pad = (weight_oihw.shape[2] - 1) // 2
    y = lax.conv_general_dilated(
        xc, wc, window_strides=(stride, stride),
        padding=((pad, pad), (pad, pad)),
        dimension_numbers=("NCHW", "OIHW", "NCHW"),
        precision=lax.Precision.HIGHEST)
    mean = y.mean(axis=(0, 2, 3), keepdims=True)
    var = y.var(axis=(0, 2, 3), keepdims=True)           # biased, like BN training
    g = gamma.reshape(1, -1, 1, 1).astype(jnp.float32)
    b = beta.reshape(1, -1, 1, 1).astype(jnp.float32)
    return (y - mean) * g / jnp.sqrt(var + eps) + b


if __name__ == "__main__":
    # CB(nIn=4, nOut=8, kSize=3) on a [2, 4, 16, 16] input, stride 1 and 2.
    N, Cin, H, W = 2, 4, 16, 16
    Cout, k = 8, 3

    key = jax.random.PRNGKey(0)
    kx, kw_, kg, kb = jax.random.split(key, 4)
    x = jax.random.normal(kx, (N, Cin, H, W), jnp.float32)
    weight = jax.random.normal(kw_, (Cout, Cin, k, k), jnp.float32) * 0.1
    gamma = 1.0 + 0.1 * jax.random.normal(kg, (Cout,), jnp.float32)
    beta = 0.1 * jax.random.normal(kb, (Cout,), jnp.float32)

    for stride in (1, 2):
        out = jax.block_until_ready(
            cb_forward(x, weight, gamma, beta, stride=stride, eps=1e-3))

        pad = (k - 1) // 2
        Ho = (H + 2 * pad - k) // stride + 1
        Wo = (W + 2 * pad - k) // stride + 1
        assert out.shape == (N, Cout, Ho, Wo), out.shape

        # Tight check vs a reference fed the same bf16-quantized inputs (kernel's
        # declared mixed-precision policy); tolerance also absorbs the kernel's
        # bf16 storage of the pre-BN conv output.
        ref_q = cb_reference(x, weight, gamma, beta, stride=stride, eps=1e-3,
                             input_dtype=jnp.bfloat16)
        # Loose sanity check vs the pure-f32 module (bounds bf16 quantization).
        ref_f = cb_reference(x, weight, gamma, beta, stride=stride, eps=1e-3,
                             input_dtype=jnp.float32)

        assert jnp.allclose(out, ref_q, atol=3e-3, rtol=3e-3), (
            stride, float(jnp.max(jnp.abs(out - ref_q))))
        assert jnp.allclose(out, ref_f, atol=5e-2, rtol=5e-2), (
            stride, float(jnp.max(jnp.abs(out - ref_f))))

    print("KERNEL_OK")
</pallas_src>

<mosaic_0001>
module attributes {stable_mosaic.version = 11 : i64} {
  func.func @conv_stats_kernel(%arg0: i32, %arg1: i32, %arg2: memref<1x4x384xbf16, #tpu.memory_space<vmem>>, %arg3: memref<1x4x128xbf16, #tpu.memory_space<vmem>>, %arg4: memref<9x8x4xbf16, #tpu.memory_space<vmem>>, %arg5: memref<1x384xbf16, #tpu.memory_space<vmem>>, %arg6: memref<1x8x384xbf16, #tpu.memory_space<vmem>>, %arg7: memref<1x8x1xf32, #tpu.memory_space<vmem>>, %arg8: memref<1x8x1xf32, #tpu.memory_space<vmem>>) attributes {dimension_semantics = [#tpu.dimension_semantics<parallel>, #tpu.dimension_semantics<arbitrary>], iteration_bounds = array<i64: 2, 1>, scalar_prefetch = 0 : i64, scratch_operands = 0 : i64, tpu.core_type = #tpu.core_type<tc>, window_params = [{transform_indices = @transform_0, window_bounds = array<i64: 1, 4, 384>}, {transform_indices = @transform_1, window_bounds = array<i64: 1, 4, 128>}, {pipeline_mode = #tpu.pipeline_mode<synchronous>, transform_indices = @transform_2, window_bounds = array<i64: 9, 8, 4>}, {transform_indices = @transform_3, window_bounds = array<i64: 1, 384>}, {transform_indices = @transform_4, window_bounds = array<i64: 1, 8, 384>}, {transform_indices = @transform_5, window_bounds = array<i64: 1, 8, 1>}, {transform_indices = @transform_6, window_bounds = array<i64: 1, 8, 1>}]} {
    %c0 = arith.constant 0 : index
    %c0_0 = arith.constant 0 : index
    %c0_1 = arith.constant 0 : index
    %0 = vector.load %arg2[%c0, %c0_0, %c0_1] : memref<1x4x384xbf16, #tpu.memory_space<vmem>>, vector<1x4x384xbf16>
    %1 = vector.shape_cast %0 : vector<1x4x384xbf16> to vector<4x384xbf16>
    %c0_2 = arith.constant 0 : index
    %c0_3 = arith.constant 0 : index
    %c0_4 = arith.constant 0 : index
    %2 = vector.load %arg3[%c0_2, %c0_3, %c0_4] : memref<1x4x128xbf16, #tpu.memory_space<vmem>>, vector<1x4x128xbf16>
    %3 = vector.shape_cast %2 : vector<1x4x128xbf16> to vector<4x128xbf16>
    %4 = tpu.concatenate %1, %3 in 1 : vector<4x384xbf16>, vector<4x128xbf16> -> vector<4x512xbf16>
    %cst = arith.constant 0.000000e+00 : f32
    %5 = vector.broadcast %cst : f32 to vector<8x384xf32>
    %c0_5 = arith.constant 0 : index
    %c0_6 = arith.constant 0 : index
    %c0_7 = arith.constant 0 : index
    %6 = vector.load %arg4[%c0_5, %c0_6, %c0_7] : memref<9x8x4xbf16, #tpu.memory_space<vmem>>, vector<1x8x4xbf16>
    %7 = vector.shape_cast %6 : vector<1x8x4xbf16> to vector<8x4xbf16>
    %8 = vector.extract_strided_slice %4 {offsets = [0, 0], sizes = [4, 384], strides = [1, 1]} : vector<4x512xbf16> to vector<4x384xbf16>
    %cst_8 = arith.constant dense<0.000000e+00> : vector<8x384xf32>
    %9 = tpu.matmul %7, %8, %cst_8 {dimension_numbers = #tpu.dot_dimension_numbers<[1], [0], [0], [1], [0, 0, 1, 1], [], []>} : vector<8x4xbf16>, vector<4x384xbf16>, vector<8x384xf32> -> vector<8x384xf32>
    %10 = arith.addf %5, %9 : vector<8x384xf32>
    %c1 = arith.constant 1 : index
    %c0_9 = arith.constant 0 : index
    %c0_10 = arith.constant 0 : index
    %11 = vector.load %arg4[%c1, %c0_9, %c0_10] : memref<9x8x4xbf16, #tpu.memory_space<vmem>>, vector<1x8x4xbf16>
    %12 = vector.shape_cast %11 : vector<1x8x4xbf16> to vector<8x4xbf16>
    %13 = vector.extract_strided_slice %4 {offsets = [0, 1], sizes = [4, 384], strides = [1, 1]} : vector<4x512xbf16> to vector<4x384xbf16>
    %cst_11 = arith.constant dense<0.000000e+00> : vector<8x384xf32>
    %14 = tpu.matmul %12, %13, %cst_11 {dimension_numbers = #tpu.dot_dimension_numbers<[1], [0], [0], [1], [0, 0, 1, 1], [], []>} : vector<8x4xbf16>, vector<4x384xbf16>, vector<8x384xf32> -> vector<8x384xf32>
    %15 = arith.addf %10, %14 : vector<8x384xf32>
    %c2 = arith.constant 2 : index
    %c0_12 = arith.constant 0 : index
    %c0_13 = arith.constant 0 : index
    %16 = vector.load %arg4[%c2, %c0_12, %c0_13] : memref<9x8x4xbf16, #tpu.memory_space<vmem>>, vector<1x8x4xbf16>
    %17 = vector.shape_cast %16 : vector<1x8x4xbf16> to vector<8x4xbf16>
    %18 = vector.extract_strided_slice %4 {offsets = [0, 2], sizes = [4, 384], strides = [1, 1]} : vector<4x512xbf16> to vector<4x384xbf16>
    %cst_14 = arith.constant dense<0.000000e+00> : vector<8x384xf32>
    %19 = tpu.matmul %17, %18, %cst_14 {dimension_numbers = #tpu.dot_dimension_numbers<[1], [0], [0], [1], [0, 0, 1, 1], [], []>} : vector<8x4xbf16>, vector<4x384xbf16>, vector<8x384xf32> -> vector<8x384xf32>
    %20 = arith.addf %15, %19 : vector<8x384xf32>
    %c3 = arith.constant 3 : index
    %c0_15 = arith.constant 0 : index
    %c0_16 = arith.constant 0 : index
    %21 = vector.load %arg4[%c3, %c0_15, %c0_16] : memref<9x8x4xbf16, #tpu.memory_space<vmem>>, vector<1x8x4xbf16>
    %22 = vector.shape_cast %21 : vector<1x8x4xbf16> to vector<8x4xbf16>
    %23 = vector.extract_strided_slice %4 {offsets = [0, 18], sizes = [4, 384], strides = [1, 1]} : vector<4x512xbf16> to vector<4x384xbf16>
    %cst_17 = arith.constant dense<0.000000e+00> : vector<8x384xf32>
    %24 = tpu.matmul %22, %23, %cst_17 {dimension_numbers = #tpu.dot_dimension_numbers<[1], [0], [0], [1], [0, 0, 1, 1], [], []>} : vector<8x4xbf16>, vector<4x384xbf16>, vector<8x384xf32> -> vector<8x384xf32>
    %25 = arith.addf %20, %24 : vector<8x384xf32>
    %c4 = arith.constant 4 : index
    %c0_18 = arith.constant 0 : index
    %c0_19 = arith.constant 0 : index
    %26 = vector.load %arg4[%c4, %c0_18, %c0_19] : memref<9x8x4xbf16, #tpu.memory_space<vmem>>, vector<1x8x4xbf16>
    %27 = vector.shape_cast %26 : vector<1x8x4xbf16> to vector<8x4xbf16>
    %28 = vector.extract_strided_slice %4 {offsets = [0, 19], sizes = [4, 384], strides = [1, 1]} : vector<4x512xbf16> to vector<4x384xbf16>
    %cst_20 = arith.constant dense<0.000000e+00> : vector<8x384xf32>
    %29 = tpu.matmul %27, %28, %cst_20 {dimension_numbers = #tpu.dot_dimension_numbers<[1], [0], [0], [1], [0, 0, 1, 1], [], []>} : vector<8x4xbf16>, vector<4x384xbf16>, vector<8x384xf32> -> vector<8x384xf32>
    %30 = arith.addf %25, %29 : vector<8x384xf32>
    %c5 = arith.constant 5 : index
    %c0_21 = arith.constant 0 : index
    %c0_22 = arith.constant 0 : index
    %31 = vector.load %arg4[%c5, %c0_21, %c0_22] : memref<9x8x4xbf16, #tpu.memory_space<vmem>>, vector<1x8x4xbf16>
    %32 = vector.shape_cast %31 : vector<1x8x4xbf16> to vector<8x4xbf16>
    %33 = vector.extract_strided_slice %4 {offsets = [0, 20], sizes = [4, 384], strides = [1, 1]} : vector<4x512xbf16> to vector<4x384xbf16>
    %cst_23 = arith.constant dense<0.000000e+00> : vector<8x384xf32>
    %34 = tpu.matmul %32, %33, %cst_23 {dimension_numbers = #tpu.dot_dimension_numbers<[1], [0], [0], [1], [0, 0, 1, 1], [], []>} : vector<8x4xbf16>, vector<4x384xbf16>, vector<8x384xf32> -> vector<8x384xf32>
    %35 = arith.addf %30, %34 : vector<8x384xf32>
    %c6 = arith.constant 6 : index
    %c0_24 = arith.constant 0 : index
    %c0_25 = arith.constant 0 : index
    %36 = vector.load %arg4[%c6, %c0_24, %c0_25] : memref<9x8x4xbf16, #tpu.memory_space<vmem>>, vector<1x8x4xbf16>
    %37 = vector.shape_cast %36 : vector<1x8x4xbf16> to vector<8x4xbf16>
    %38 = vector.extract_strided_slice %4 {offsets = [0, 36], sizes = [4, 384], strides = [1, 1]} : vector<4x512xbf16> to vector<4x384xbf16>
    %cst_26 = arith.constant dense<0.000000e+00> : vector<8x384xf32>
    %39 = tpu.matmul %37, %38, %cst_26 {dimension_numbers = #tpu.dot_dimension_numbers<[1], [0], [0], [1], [0, 0, 1, 1], [], []>} : vector<8x4xbf16>, vector<4x384xbf16>, vector<8x384xf32> -> vector<8x384xf32>
    %40 = arith.addf %35, %39 : vector<8x384xf32>
    %c7 = arith.constant 7 : index
    %c0_27 = arith.constant 0 : index
    %c0_28 = arith.constant 0 : index
    %41 = vector.load %arg4[%c7, %c0_27, %c0_28] : memref<9x8x4xbf16, #tpu.memory_space<vmem>>, vector<1x8x4xbf16>
    %42 = vector.shape_cast %41 : vector<1x8x4xbf16> to vector<8x4xbf16>
    %43 = vector.extract_strided_slice %4 {offsets = [0, 37], sizes = [4, 384], strides = [1, 1]} : vector<4x512xbf16> to vector<4x384xbf16>
    %cst_29 = arith.constant dense<0.000000e+00> : vector<8x384xf32>
    %44 = tpu.matmul %42, %43, %cst_29 {dimension_numbers = #tpu.dot_dimension_numbers<[1], [0], [0], [1], [0, 0, 1, 1], [], []>} : vector<8x4xbf16>, vector<4x384xbf16>, vector<8x384xf32> -> vector<8x384xf32>
    %45 = arith.addf %40, %44 : vector<8x384xf32>
    %c8 = arith.constant 8 : index
    %c0_30 = arith.constant 0 : index
    %c0_31 = arith.constant 0 : index
    %46 = vector.load %arg4[%c8, %c0_30, %c0_31] : memref<9x8x4xbf16, #tpu.memory_space<vmem>>, vector<1x8x4xbf16>
    %47 = vector.shape_cast %46 : vector<1x8x4xbf16> to vector<8x4xbf16>
    %48 = vector.extract_strided_slice %4 {offsets = [0, 38], sizes = [4, 384], strides = [1, 1]} : vector<4x512xbf16> to vector<4x384xbf16>
    %cst_32 = arith.constant dense<0.000000e+00> : vector<8x384xf32>
    %49 = tpu.matmul %47, %48, %cst_32 {dimension_numbers = #tpu.dot_dimension_numbers<[1], [0], [0], [1], [0, 0, 1, 1], [], []>} : vector<8x4xbf16>, vector<4x384xbf16>, vector<8x384xf32> -> vector<8x384xf32>
    %50 = arith.addf %45, %49 : vector<8x384xf32>
    %51 = arith.truncf %50 : vector<8x384xf32> to vector<8x384xbf16>
    %c0_33 = arith.constant 0 : index
    %c0_34 = arith.constant 0 : index
    %c0_35 = arith.constant 0 : index
    %52 = vector.load %arg6[%c0_33, %c0_34, %c0_35] : memref<1x8x384xbf16, #tpu.memory_space<vmem>>, vector<1x8x384xbf16>
    %53 = vector.shape_cast %52 : vector<1x8x384xbf16> to vector<8x384xbf16>
    %54 = vector.shape_cast %51 : vector<8x384xbf16> to vector<1x8x384xbf16>
    tpu.vector_store %arg6[%c0_33, %c0_34, %c0_35], %54 {strides = array<i32>} : memref<1x8x384xbf16, #tpu.memory_space<vmem>>, vector<1x8x384xbf16>,
    %c0_36 = arith.constant 0 : index
    %c0_37 = arith.constant 0 : index
    %55 = vector.load %arg5[%c0_36, %c0_37] : memref<1x384xbf16, #tpu.memory_space<vmem>>, vector<1x384xbf16>
    %56 = arith.extf %55 : vector<1x384xbf16> to vector<1x384xf32>
    %57 = vector.broadcast %56 : vector<1x384xf32> to vector<8x384xf32>
    %58 = arith.mulf %50, %57 : vector<8x384xf32>
    %c0_i32 = arith.constant 0 : i32
    %59 = arith.cmpi eq, %arg1, %c0_i32 : i32
    %60 = arith.extui %59 : i1 to i32
    %c0_i32_38 = arith.constant 0 : i32
    %61 = arith.cmpi ne, %60, %c0_i32_38 : i32
    scf.if %61 {
      %cst_53 = arith.constant 0.000000e+00 : f32
      %79 = vector.broadcast %cst_53 : f32 to vector<8x1xf32>
      %c0_54 = arith.constant 0 : index
      %c0_55 = arith.constant 0 : index
      %c0_56 = arith.constant 0 : index
      %80 = vector.load %arg7[%c0_54, %c0_55, %c0_56] : memref<1x8x1xf32, #tpu.memory_space<vmem>>, vector<1x8x1xf32>
      %81 = vector.shape_cast %80 : vector<1x8x1xf32> to vector<8x1xf32>
      %82 = vector.shape_cast %79 : vector<8x1xf32> to vector<1x8x1xf32>
      tpu.vector_store %arg7[%c0_54, %c0_55, %c0_56], %82 {strides = array<i32>} : memref<1x8x1xf32, #tpu.memory_space<vmem>>, vector<1x8x1xf32>,
      %cst_57 = arith.constant 0.000000e+00 : f32
      %83 = vector.broadcast %cst_57 : f32 to vector<8x1xf32>
      %c0_58 = arith.constant 0 : index
      %c0_59 = arith.constant 0 : index
      %c0_60 = arith.constant 0 : index
      %84 = vector.load %arg8[%c0_58, %c0_59, %c0_60] : memref<1x8x1xf32, #tpu.memory_space<vmem>>, vector<1x8x1xf32>
      %85 = vector.shape_cast %84 : vector<1x8x1xf32> to vector<8x1xf32>
      %86 = vector.shape_cast %83 : vector<8x1xf32> to vector<1x8x1xf32>
      tpu.vector_store %arg8[%c0_58, %c0_59, %c0_60], %86 {strides = array<i32>} : memref<1x8x1xf32, #tpu.memory_space<vmem>>, vector<1x8x1xf32>,
    } else {
    }
    %c0_39 = arith.constant 0 : index
    %c0_40 = arith.constant 0 : index
    %c0_41 = arith.constant 0 : index
    %62 = vector.load %arg7[%c0_39, %c0_40, %c0_41] : memref<1x8x1xf32, #tpu.memory_space<vmem>>, vector<1x8x1xf32>
    %63 = vector.shape_cast %62 : vector<1x8x1xf32> to vector<8x1xf32>
    %cst_42 = arith.constant dense<0.000000e+00> : vector<8xf32>
    %64 = vector.multi_reduction <add>, %58, %cst_42 [1] : vector<8x384xf32> to vector<8xf32>
    %65 = vector.shape_cast %64 : vector<8xf32> to vector<8x1xf32>
    %66 = arith.addf %63, %65 : vector<8x1xf32>
    %c0_43 = arith.constant 0 : index
    %c0_44 = arith.constant 0 : index
    %c0_45 = arith.constant 0 : index
    %67 = vector.load %arg7[%c0_43, %c0_44, %c0_45] : memref<1x8x1xf32, #tpu.memory_space<vmem>>, vector<1x8x1xf32>
    %68 = vector.shape_cast %67 : vector<1x8x1xf32> to vector<8x1xf32>
    %69 = vector.shape_cast %66 : vector<8x1xf32> to vector<1x8x1xf32>
    tpu.vector_store %arg7[%c0_43, %c0_44, %c0_45], %69 {strides = array<i32>} : memref<1x8x1xf32, #tpu.memory_space<vmem>>, vector<1x8x1xf32>,
    %c0_46 = arith.constant 0 : index
    %c0_47 = arith.constant 0 : index
    %c0_48 = arith.constant 0 : index
    %70 = vector.load %arg8[%c0_46, %c0_47, %c0_48] : memref<1x8x1xf32, #tpu.memory_space<vmem>>, vector<1x8x1xf32>
    %71 = vector.shape_cast %70 : vector<1x8x1xf32> to vector<8x1xf32>
    %72 = arith.mulf %58, %50 : vector<8x384xf32>
    %cst_49 = arith.constant dense<0.000000e+00> : vector<8xf32>
    %73 = vector.multi_reduction <add>, %72, %cst_49 [1] : vector<8x384xf32> to vector<8xf32>
    %74 = vector.shape_cast %73 : vector<8xf32> to vector<8x1xf32>
    %75 = arith.addf %71, %74 : vector<8x1xf32>
    %c0_50 = arith.constant 0 : index
    %c0_51 = arith.constant 0 : index
    %c0_52 = arith.constant 0 : index
    %76 = vector.load %arg8[%c0_50, %c0_51, %c0_52] : memref<1x8x1xf32, #tpu.memory_space<vmem>>, vector<1x8x1xf32>
    %77 = vector.shape_cast %76 : vector<1x8x1xf32> to vector<8x1xf32>
    %78 = vector.shape_cast %75 : vector<8x1xf32> to vector<1x8x1xf32>
    tpu.vector_store %arg8[%c0_50, %c0_51, %c0_52], %78 {strides = array<i32>} : memref<1x8x1xf32, #tpu.memory_space<vmem>>, vector<1x8x1xf32>,
    return
  }
  func.func @transform_0(%arg0: i32, %arg1: i32) -> (i32, i32, i32) {
    %c0_i32 = arith.constant 0 : i32
    %c0_i32_0 = arith.constant 0 : i32
    return %arg0, %c0_i32, %arg1 : i32, i32, i32
  }
  func.func @transform_1(%arg0: i32, %arg1: i32) -> (i32, i32, i32) {
    %c1_i32 = arith.constant 1 : i32
    %0 = arith.addi %arg1, %c1_i32 : i32
    %c3_i32 = arith.constant 3 : i32
    %1 = arith.muli %0, %c3_i32 : i32
    %c0_i32 = arith.constant 0 : i32
    %c0_i32_0 = arith.constant 0 : i32
    return %arg0, %c0_i32, %1 : i32, i32, i32
  }
  func.func @transform_2(%arg0: i32, %arg1: i32) -> (i32, i32, i32) {
    %c0_i32 = arith.constant 0 : i32
    %c0_i32_0 = arith.constant 0 : i32
    %c0_i32_1 = arith.constant 0 : i32
    %c0_i32_2 = arith.constant 0 : i32
    return %c0_i32, %c0_i32_0, %c0_i32_1 : i32, i32, i32
  }
  func.func @transform_3(%arg0: i32, %arg1: i32) -> (i32, i32) {
    %c0_i32 = arith.constant 0 : i32
    %c0_i32_0 = arith.constant 0 : i32
    return %c0_i32, %arg1 : i32, i32
  }
  func.func @transform_4(%arg0: i32, %arg1: i32) -> (i32, i32, i32) {
    %c0_i32 = arith.constant 0 : i32
    %c0_i32_0 = arith.constant 0 : i32
    return %arg0, %c0_i32, %arg1 : i32, i32, i32
  }
  func.func @transform_5(%arg0: i32, %arg1: i32) -> (i32, i32, i32) {
    %c0_i32 = arith.constant 0 : i32
    %c0_i32_0 = arith.constant 0 : i32
    %c0_i32_1 = arith.constant 0 : i32
    return %arg0, %c0_i32, %c0_i32_0 : i32, i32, i32
  }
  func.func @transform_6(%arg0: i32, %arg1: i32) -> (i32, i32, i32) {
    %c0_i32 = arith.constant 0 : i32
    %c0_i32_0 = arith.constant 0 : i32
    %c0_i32_1 = arith.constant 0 : i32
    return %arg0, %c0_i32, %c0_i32_0 : i32, i32, i32
  }
}

</mosaic_0001>

<bundles_post_ra>
// kernel: tpu_custom_call.1
= control target key start
LH: loop header
LB: loop body
LE: loop exit
PB: predicated region body
PF: predicated region fallthrough
CT: control target
= control target key end

     0   :  { %12 = vsyncpa [#allocation3], 0  ;;  %s2320_s0 = inlined_call_operand.vmem [shape: bf16[2,4,512], index: 0, kind: input, shape index: {}]   ;;  %s2321_s1 = inlined_call_operand.vmem [shape: bf16[2,4,512], index: 1, kind: input, shape index: {}]   ;;  %s2322_s2 = inlined_call_operand.vmem [shape: bf16[9,8,4], index: 2, kind: input, shape index: {}]   ;;  %s2323_s3 = inlined_call_operand.vmem [shape: bf16[1,384], index: 3, kind: input, shape index: {}]   ;;  %s2324_s4 = inlined_call_operand.hbm [shape: bf16[2,8,384], index: 4, kind: output, shape index: {0}]   ;;  %s2325_s5 = inlined_call_operand.vmem [shape: f32[2,8,1], index: 5, kind: output, shape index: {1}]   ;;  %s2326_s6 = inlined_call_operand.vmem [shape: f32[2,8,1], index: 6, kind: output, shape index: {2}]  }
   0x1   :  { %14 = vsyncpa [#allocation3 + $0x1], 0  ;;  %s2030_s21 = smov 0   ;;  %s2032_s22 = smov 0  }
   0x2   :  { %s2034_s23 = smov 0   ;;  %s2036_s24 = smov 0  }
   0x3   :  { %s2038_s25 = smov 0   ;;  %s2040_s26 = smov 0  }
   0x4 LB: > { %s1638_s27 = sadd.s32 4294967295, %s1980_s26   ;;  %s1639_s28 = sadd.s32 4294967294, %s1980_s26   ;;  %s1980_s26 = sphi %s2040_s26, %s20_s26   ;;  %s1976_s25 = sphi %s2038_s25, %s2333_s25   ;;  %s1972_s24 = sphi %s2036_s24, %s2332_s24   ;;  %s1968_s23 = sphi %s2034_s23, %s2331_s23   ;;  %s1964_s22 = sphi %s2032_s22, %s2330_s22   ;;  %s1960_s21 = sphi %s2030_s21, %s2329_s21  }
   0x5   : > { %s32_s29 = sadd.s32 1, %s1976_s25  ;;  %s148_s30 = sadd.s32 1, %s1968_s23 }
   0x6   : > { %p34_p0 = scmp.ge.s32.totalorder %s32_s29, 2  ;;  %p158_p1 = scmp.ne.s32.totalorder %s1968_s23, %s1964_s22 }
   0x7   : > { %p159_p2 = scmp.eq.s32.totalorder %s1638_s27, 1  ;;  %p164_p3 = scmp.ne.s32.totalorder %s1964_s22, %s1960_s21 }
   0x8   : > { %s2335_s29 = smov (%p34_p0, %s32_s29), 0  ;;  %p165_p5 = scmp.eq.s32.totalorder %s1639_s28, 1 }
   0x9   : > { %p2070_p4 = por %p159_p2, %p158_p1  ;;  %s143_s8 = ssub.s32 %s1976_s25, %s2335_s29 }
   0xa   : > { %p1643_p6 = scmp.ge.s32.totalorder %s1980_s26, 1  ;;  %p146_p7 = scmp.eq.s32.totalorder %s143_s8, 0 }
   0xb   : > { %p2077_p8 = por %p165_p5, %p164_p3  ;;  %p282_p9 = scmp.lt.s32.totalorder %s1980_s26, 3 }
   0xc   : > { %s2083_s10 = scalar_select %p146_p7, %s1968_s23, %s148_s30  }
   0xd   : > { %p283_p10 = pnand %p1643_p6, %p282_p9 }
   0xe   : > { %p347_p11 = scmp.lt.s32.totalorder (!%p283_p10), %s1972_s24, 1  ;;  %v394_v0 = vlaneseq (!%p283_p10)  ;;  %v1982_v1 = vmov (!%p283_p10), 1983009808   ;;  %v1983_v5 = vmov (!%p283_p10), 0.0   ;;  %v1984_v6 = vmov (!%p283_p10), 0   ;;  %s1986_s17 = smov (!%p283_p10), 127  }
   0xf   : > { %286 = sbr.rel (%p283_p10) target bundleno = 615 (0x267), region = 36  ;;  %v392_v2 = vunpack.c.l.s4 (!%p283_p10), %v1982_v1  ;;  %1714 = vmatprep.subr.bf16.mxu1 (!%p283_p10), %v1983_v5  ;;  %468 = vmatprep.mubr.bf16.mxu0 (!%p283_p10), %v1984_v6  ;;  %vm1985_vm0 = vmmov (!%p283_p10), 0   ;;  %s1987_s27 = smov (!%p283_p10), 126   ;;  %vm418_vm1 = vcmask (!%p283_p10), 1039360   ;;  %vm426_vm2 = vcmask (!%p283_p10), 1041408  }
  0x10   : > { %v2087_v3 = vshrl.u32 (!%p283_p10), %v394_v0, 7  ;;  %1716 = vmatprep.mubr.msk.bf16.mxu1 (!%p283_p10), %vm1985_vm0, %v1983_v5  ;;  %s1988_s28 = smov (!%p283_p10), 110   ;;  %s1989_s30 = smov (!%p283_p10), 109   ;;  %v1650_v22 = vld [vmem:[%s2322_s2 + $0x4] sm:$0xf] (!%p283_p10)  ;;  %vm422_vm3 = vcmask (!%p283_p10), 31744  }
  0x11   : > { %v393_v4 = vunpack.c.0.s8 (!%p283_p10), %v392_v2  ;;  %s1990_s8 = smov (!%p283_p10), 108   ;;  %s1992_s13 = smov (!%p283_p10), 91   ;;  %vm620_vm4 = vcmask (!%p283_p10), 1031168   ;;  %vm730_vm5 = vcmask (!%p283_p10), 900096   ;;  %v406_v35 = vld [vmem:[%s2322_s2] sm:$0xf] (!%p283_p10) }
  0x12   : > { %s1993_s14 = smov (!%p283_p10), 90   ;;  %vm840_vm6 = vcmask (!%p283_p10), 891904   ;;  %v1657_v46 = vld [vmem:[%s2322_s2 + $0x8] sm:$0xf] (!%p283_p10)  ;;  %vm950_vm7 = vcmask (!%p283_p10), 883712   ;;  %vm1060_vm8 = vcmask (!%p283_p10), 752640  }
  0x13   : > { %v396_v7 = vsub.s32 (!%p283_p10), %v393_v4, %v2087_v3  ;;  %v1661_v56 = vld [vmem:[%s2322_s2 + $0xc] sm:$0xf] (!%p283_p10)  ;;  %v1665_v2 = vld [vmem:[%s2322_s2 + $0x10] sm:$0xf] (!%p283_p10)  ;;  %vm1170_vm9 = vcmask (!%p283_p10), 744448   ;;  %vm1280_vm10 = vcmask (!%p283_p10), 736256  }
  0x14   : > { %vm1432_vm11 = vcmask (!%p283_p10), 7168   ;;  %s1833_s18 = smul.u32 (!%p283_p10), 192, %s1972_s24 }
  0x16   : > { %s348_s11 = scalar_select %p347_p11, %s1972_s24, 1 }
  0x18   : > { %s2091_s12 = sshll.u32 %s348_s11, 3  ;;  %s1991_s11 = smov 92  }
  0x19   : > { %s354_s15 = scalar_lea.vmem %s2320_s0, %s2091_s12  ;;  %s1692_s16 = sadd.s32 6, %s2091_s12 }
  0x1a   : > { %v387_v8 = vld [vmem:[%s354_s15] sm:$0x3f]  ;;  %s369_s20 = scalar_lea.vmem %s2321_s1, %s1692_s16 }
  0x1b   : > { %v397_v9 = vrot.slane %v387_v8, %v396_v7  ;;  %v390_v10 = vcombine.high %v387_v8, %v387_v8  ;;  %v388_v13 = vld [vmem:[%s369_s20] sm:$0x3] }
  0x1d   : > { %410 = vrot.lane.b32.xlu0 %v397_v9, %s1986_s17  ;;  %v2101_v11 = vrot.slane %v390_v10, %v396_v7  ;;  %v405_v12 = vcombine.high %v397_v9, %v397_v9  ;;  %v521_v24 = vsel %vm426_vm2, %v397_v9, 0 }
  0x1f   : > { %414 = vrot.lane.b32.xlu1 %v2101_v11, %s1986_s17  ;;  %v527_v26 = vsel %vm426_vm2, %v2101_v11, 0 }
  0x21   : > { %412 = vrot.lane.b32.xlu0 %v405_v12, %s1986_s17 }
  0x23   : > { %416 = vrot.lane.b32.xlu1 %v388_v13, %s1986_s17  ;;  %s2262_s17 = scalar_lea.vmem %s2326_s6, %s2091_s12 }
  0x24   : > { %1434 = vst.msk [vmem:[%s2262_s17] sm:$0xff] %vm1432_vm11, %v1983_v5 }
  0x25   : > { %612 = vrot.lane.b32.xlu0 %v397_v9, %s1987_s27 }
  0x27   : > { %614 = vrot.lane.b32.xlu1 %v405_v12, %s1987_s27 }
  0x29   : > { %616 = vrot.lane.b32.xlu0 %v2101_v11, %s1987_s27 }
  0x2b   : > { %618 = vrot.lane.b32.xlu1 %v388_v13, %s1987_s27 }
  0x2d   : > { %722 = vrot.lane.b32.xlu0 %v397_v9, %s1988_s28 }
  0x2f   : > { %724 = vrot.lane.b32.xlu1 %v405_v12, %s1988_s28 }
  0x31   : > { %726 = vrot.lane.b32.xlu0 %v2101_v11, %s1988_s28 }
  0x33   : > { %728 = vrot.lane.b32.xlu1 %v388_v13, %s1988_s28  ;;  %s2244_s28 = scalar_lea.vmem %s2325_s5, %s2091_s12  ;;  %s1994_s12 = smov [#allocation2]  }
  0x34   : > { %1433 = vst.msk [vmem:[%s2244_s28] sm:$0xff] %vm1432_vm11, %v1983_v5  ;;  %s1906_s15 = sshll.u32 %s1994_s12, 4  ;;  %s1907_s15 = int_to_ptr.vmem [resolvable:$false] %s1906_s15 }
  0x35   : > { %832 = vrot.lane.b32.xlu0 %v397_v9, %s1989_s30  ;;  %s1908_s16 = scalar_lea.vmem %s1907_s15, 384 }
  0x37   : > { %834 = vrot.lane.b32.xlu1 %v405_v12, %s1989_s30 }
  0x39   : > { %836 = vrot.lane.b32.xlu0 %v2101_v11, %s1989_s30 }
  0x3b   : > { %838 = vrot.lane.b32.xlu1 %v388_v13, %s1989_s30  ;;  %s2271_s30 = scalar_lea.hbm %s2324_s4, %s1833_s18 }
  0x3d   : > { %942 = vrot.lane.b32.xlu0 %v397_v9, %s1990_s8 }
  0x3f   : > { %944 = vrot.lane.b32.xlu1 %v405_v12, %s1990_s8 }
  0x41   : > { %946 = vrot.lane.b32.xlu0 %v2101_v11, %s1990_s8 }
  0x43   : > { %948 = vrot.lane.b32.xlu1 %v388_v13, %s1990_s8 }
  0x45   : > { %1052 = vrot.lane.b32.xlu0 %v397_v9, %s1991_s11 }
  0x47   : > { %1054 = vrot.lane.b32.xlu1 %v405_v12, %s1991_s11 }
  0x49   : > { %1056 = vrot.lane.b32.xlu0 %v2101_v11, %s1991_s11 }
  0x4b   : > { %1058 = vrot.lane.b32.xlu1 %v388_v13, %s1991_s11  ;;  %s327_s11 = sand.u32 1, %s1964_s22  }
  0x4c   : > { %s1454_s8 = scalar_lea.sflag [#allocation3], %s327_s11 }
  0x4d   : > { %1162 = vrot.lane.b32.xlu0 %v397_v9, %s1992_s13 }
  0x4f   : > { %1164 = vrot.lane.b32.xlu1 %v405_v12, %s1992_s13 }
  0x51   : > { %1166 = vrot.lane.b32.xlu0 %v2101_v11, %s1992_s13 }
  0x53   : > { %1168 = vrot.lane.b32.xlu1 %v388_v13, %s1992_s13  ;;  %s1832_s13 = smul.u32 12, %s327_s11 }
  0x55   : > { %1272 = vrot.lane.b32.xlu0 %v397_v9, %s1993_s14 }
  0x57   : > { %1274 = vrot.lane.b32.xlu1 %v405_v12, %s1993_s14 }
  0x59   : > { %1276 = vrot.lane.b32.xlu0 %v2101_v11, %s1993_s14 }
  0x5b   : > { %1278 = vrot.lane.b32.xlu1 %v388_v13, %s1993_s14  ;;  %s329_s14 = scalar_lea.vmem [#allocation2], %s1832_s13 }
  0x5c   : > { %s1478_s19 = sshll.u32 %s329_s14, 4  ;;  %s1479_s19 = int_to_ptr.vmem [resolvable:$true] %s1478_s19 }
  0x5d   : > { %s1902_s13 = scalar_lea.vmem %s1479_s19, 192  ;;  %p1909_p1 = scmp.lt.s32.totalorder %s1479_s19, %s1907_s15 }
  0x5e   : > { %p1903_p12 = scmp.ne.s32.totalorder %s1479_s19, %s1902_s13  ;;  %p1910_p2 = scmp.lt.s32.totalorder %s1908_s16, %s1902_s13 }
  0x60   : > { %p1904_p13 = pnand %p1903_p12, %p2070_p4  ;;  %p1911_p3 = por %p1910_p2, %p1909_p1 }
  0x62   : > { %p1905_p0 = pneg %p1904_p13 }
  0x64   : > { %p1912_p5 = pnand %p1911_p3, %p1905_p0 }
  0x8f   : > { %v411_v14 = vpop.permute.xlu0 %410 }
  0x91   : > { %v415_v15 = vpop.permute.xlu1 %414 }
  0x93   : > { %v413_v16 = vpop.permute.xlu0 %412 }
  0x94   : > { %v420_v17 = vsel %vm418_vm1, %v413_v16, %v415_v15  ;;  %v419_v18 = vsel %vm418_vm1, %v411_v14, %v413_v16 }
  0x95   : > { %1651 = vmatprep.subr.msk.bf16.mxu0 %vm426_vm2, %v420_v17  ;;  %v417_v19 = vpop.permute.xlu1 %416  ;;  %v428_v20 = vsel %vm426_vm2, %v419_v18, 0 }
  0x96   : > { %437 = vmatpush1.bf16.msra.mxu0 %v428_v20  ;;  %v421_v21 = vsel %vm418_vm1, %v415_v15, %v417_v19  ;;  %v1669_v15 = vld [vmem:[%s2322_s2 + $0x14] sm:$0xf] }
  0x97   : > { %v434_v23 = vsel %vm426_vm2, %v421_v21, 0  ;;  %1654 = vmatprep.subr.msk.bf16.mxu0 %vm426_vm2, %v405_v12  ;;  %v613_v25 = vpop.permute.xlu0 %612 }
  0x98   : > { %1715 = vmatpush3.bf16.msra.mxu1 %v434_v23 }
  0x99   : > { %1652 = vmatmul.mubr.msk.bf16.vlgmr.msra.gmra.mrb[0].mxu0 %vm422_vm3, %v1650_v22  ;;  %1720 = vmatprep.subr.bf16.mxu1 %v1983_v5  ;;  %v615_v27 = vpop.permute.xlu1 %614 }
  0x9a   : > { %530 = vmatpush1.bf16.msra.mxu0 %v521_v24  ;;  %561 = vmatprep.mubr.bf16.mxu0 %v1984_v6  ;;  %v621_v32 = vsel %vm620_vm4, %v613_v25, %v615_v27  ;;  %v1673_v25 = vld [vmem:[%s2322_s2 + $0x18] sm:$0xf] }
  0x9b   : > { %1717 = vmatmul.mubr.msk.bf16.vlgmr.msra.gmra.mrb[0].mxu1 %vm422_vm3, %v1650_v22  ;;  %v617_v28 = vpop.permute.xlu0 %616  ;;  %v628_v36 = vsel %vm426_vm2, %v621_v32, 0  ;;  %v1677_v32 = vld [vmem:[%s2322_s2 + $0x1c] sm:$0xf] }
  0x9c   : > { %1721 = vmatpush3.bf16.msra.mxu1 %v527_v26  ;;  %v622_v29 = vsel %vm620_vm4, %v615_v27, %v617_v28  ;;  %1722 = vmatprep.mubr.msk.bf16.mxu1 %vm1985_vm0, %v1983_v5 }
  0x9d   : > { %v619_v30 = vpop.permute.xlu1 %618  ;;  %1658 = vmatprep.subr.msk.bf16.mxu0 %vm426_vm2, %v622_v29  ;;  %1726 = vmatprep.subr.bf16.mxu1 %v1983_v5 }
  0x9e   : > { %v623_v34 = vsel %vm620_vm4, %v617_v28, %v619_v30 }
  0x9f   : > { %v723_v31 = vpop.permute.xlu0 %722  ;;  %v634_v39 = vsel %vm426_vm2, %v623_v34, 0 }
  0xa1   : > { %v725_v33 = vpop.permute.xlu1 %724 }
  0xa2   : > { %v731_v42 = vsel %vm730_vm5, %v723_v31, %v725_v33 }
  0xa3   : > { %v727_v37 = vpop.permute.xlu0 %726  ;;  %v738_v47 = vsel %vm426_vm2, %v731_v42, 0 }
  0xa4   : > { %v732_v38 = vsel %vm730_vm5, %v725_v33, %v727_v37 }
  0xa5   : > { %1655 = vmatmul.mubr.msk.bf16.vlgmr.msra.gmra.mrb[0].mxu0 %vm422_vm3, %v406_v35  ;;  %v729_v41 = vpop.permute.xlu1 %728 }
  0xa6   : > { %637 = vmatpush1.bf16.msra.mxu0 %v628_v36  ;;  %668 = vmatprep.mubr.bf16.mxu0 %v1984_v6  ;;  %v733_v45 = vsel %vm730_vm5, %v727_v37, %v729_v41  ;;  %v1400_v37 = vsub.s32 0, %v2087_v3 }
  0xa7   : > { %1723 = vmatmul.mubr.msk.bf16.vlgmr.msra.gmra.mrb[0].mxu1 %vm422_vm3, %v406_v35  ;;  %1662 = vmatprep.subr.msk.bf16.mxu0 %vm426_vm2, %v732_v38  ;;  %v833_v40 = vpop.permute.xlu0 %832  ;;  %v744_v49 = vsel %vm426_vm2, %v733_v45, 0  ;;  %v1681_v35 = vld [vmem:[%s2322_s2 + $0x20] sm:$0xf]  ;;  %v1404_v38 = vsub.s32 2, %v2087_v3 }
  0xa8   : > { %1727 = vmatpush3.bf16.msra.mxu1 %v634_v39  ;;  %1728 = vmatprep.mubr.msk.bf16.mxu1 %vm1985_vm0, %v1983_v5  ;;  %v1408_v39 = vsub.s32 4, %v2087_v3 }
  0xa9   : > { %1732 = vmatprep.subr.bf16.mxu1 %v1983_v5  ;;  %v835_v43 = vpop.permute.xlu1 %834 }
  0xaa   : > { %v841_v52 = vsel %vm840_vm6, %v833_v40, %v835_v43 }
  0xab   : > { %v837_v44 = vpop.permute.xlu0 %836  ;;  %v848_v57 = vsel %vm426_vm2, %v841_v52, 0 }
  0xac   : > { %v842_v48 = vsel %vm840_vm6, %v835_v43, %v837_v44 }
  0xad   : > { %v839_v51 = vpop.permute.xlu1 %838 }
  0xae   : > { %v843_v55 = vsel %vm840_vm6, %v837_v44, %v839_v51 }
  0xaf   : > { %v943_v50 = vpop.permute.xlu0 %942  ;;  %v854_v59 = vsel %vm426_vm2, %v843_v55, 0 }
  0xb1   : > { %1659 = vmatmul.mubr.msk.bf16.vlgmr.msra.gmra.mrb[0].mxu0 %vm422_vm3, %v1657_v46  ;;  %v945_v53 = vpop.permute.xlu1 %944 }
  0xb2   : > { %747 = vmatpush1.bf16.msra.mxu0 %v738_v47  ;;  %778 = vmatprep.mubr.bf16.mxu0 %v1984_v6  ;;  %v951_v62 = vsel %vm950_vm7, %v943_v50, %v945_v53 }
  0xb3   : > { %1729 = vmatmul.mubr.msk.bf16.vlgmr.msra.gmra.mrb[0].mxu1 %vm422_vm3, %v1657_v46  ;;  %1666 = vmatprep.subr.msk.bf16.mxu0 %vm426_vm2, %v842_v48  ;;  %v947_v54 = vpop.permute.xlu0 %946  ;;  %v958_v4 = vsel %vm426_vm2, %v951_v62, 0 }
  0xb4   : > { %1733 = vmatpush3.bf16.msra.mxu1 %v744_v49  ;;  %1734 = vmatprep.mubr.msk.bf16.mxu1 %vm1985_vm0, %v1983_v5  ;;  %v952_v58 = vsel %vm950_vm7, %v945_v53, %v947_v54 }
  0xb5   : > { %1738 = vmatprep.subr.bf16.mxu1 %v1983_v5  ;;  %v949_v61 = vpop.permute.xlu1 %948 }
  0xb6   : > { %v953_v1 = vsel %vm950_vm7, %v947_v54, %v949_v61 }
  0xb7   : > { %v1053_v60 = vpop.permute.xlu0 %1052  ;;  %v964_v8 = vsel %vm426_vm2, %v953_v1, 0 }
  0xb9   : > { %v1055_v63 = vpop.permute.xlu1 %1054 }
  0xba   : > { %v1061_v11 = vsel %vm1060_vm8, %v1053_v60, %v1055_v63 }
  0xbb   : > { %v1057_v0 = vpop.permute.xlu0 %1056  ;;  %v1068_v16 = vsel %vm426_vm2, %v1061_v11, 0 }
  0xbc   : > { %v1062_v7 = vsel %vm1060_vm8, %v1055_v63, %v1057_v0 }
  0xbd   : > { %1663 = vmatmul.mubr.msk.bf16.vlgmr.msra.gmra.mrb[0].mxu0 %vm422_vm3, %v1661_v56  ;;  %v1059_v10 = vpop.permute.xlu1 %1058 }
  0xbe   : > { %857 = vmatpush1.bf16.msra.mxu0 %v848_v57  ;;  %888 = vmatprep.mubr.bf16.mxu0 %v1984_v6  ;;  %v1063_v14 = vsel %vm1060_vm8, %v1057_v0, %v1059_v10 }
  0xbf   : > { %1735 = vmatmul.mubr.msk.bf16.vlgmr.msra.gmra.mrb[0].mxu1 %vm422_vm3, %v1661_v56  ;;  %1670 = vmatprep.subr.msk.bf16.mxu0 %vm426_vm2, %v952_v58  ;;  %v1163_v9 = vpop.permute.xlu0 %1162  ;;  %v1074_v18 = vsel %vm426_vm2, %v1063_v14, 0 }
  0xc0   : > { %1739 = vmatpush3.bf16.msra.mxu1 %v854_v59  ;;  %1740 = vmatprep.mubr.msk.bf16.mxu1 %vm1985_vm0, %v1983_v5 }
  0xc1   : > { %1744 = vmatprep.subr.bf16.mxu1 %v1983_v5  ;;  %v1165_v12 = vpop.permute.xlu1 %1164 }
  0xc2   : > { %v1171_v21 = vsel %vm1170_vm9, %v1163_v9, %v1165_v12 }
  0xc3   : > { %v1167_v13 = vpop.permute.xlu0 %1166  ;;  %v1178_v26 = vsel %vm426_vm2, %v1171_v21, 0 }
  0xc4   : > { %v1172_v17 = vsel %vm1170_vm9, %v1165_v12, %v1167_v13 }
  0xc5   : > { %v1169_v20 = vpop.permute.xlu1 %1168 }
  0xc6   : > { %v1173_v24 = vsel %vm1170_vm9, %v1167_v13, %v1169_v20 }
  0xc7   : > { %v1273_v19 = vpop.permute.xlu0 %1272  ;;  %v1184_v28 = vsel %vm426_vm2, %v1173_v24, 0 }
  0xc9   : > { %1667 = vmatmul.mubr.msk.bf16.vlgmr.msra.gmra.mrb[0].mxu0 %vm422_vm3, %v1665_v2  ;;  %v1275_v22 = vpop.permute.xlu1 %1274 }
  0xca   : > { %967 = vmatpush1.bf16.msra.mxu0 %v958_v4  ;;  %998 = vmatprep.mubr.bf16.mxu0 %v1984_v6  ;;  %v1281_v30 = vsel %vm1280_vm10, %v1273_v19, %v1275_v22 }
  0xcb   : > { %1741 = vmatmul.mubr.msk.bf16.vlgmr.msra.gmra.mrb[0].mxu1 %vm422_vm3, %v1665_v2  ;;  %1674 = vmatprep.subr.msk.bf16.mxu0 %vm426_vm2, %v1062_v7  ;;  %v1277_v23 = vpop.permute.xlu0 %1276  ;;  %v1288_v33 = vsel %vm426_vm2, %v1281_v30, 0 }
  0xcc   : > { %1745 = vmatpush3.bf16.msra.mxu1 %v964_v8  ;;  %1746 = vmatprep.mubr.msk.bf16.mxu1 %vm1985_vm0, %v1983_v5  ;;  %v1282_v27 = vsel %vm1280_vm10, %v1275_v22, %v1277_v23 }
  0xcd   : > { %1750 = vmatprep.subr.bf16.mxu1 %v1983_v5  ;;  %v1279_v29 = vpop.permute.xlu1 %1278 }
  0xce   : > { %v1283_v31 = vsel %vm1280_vm10, %v1277_v23, %v1279_v29 }
  0xcf   : > { %v1294_v34 = vsel %vm426_vm2, %v1283_v31, 0 }
  0xd5   : > { %1671 = vmatmul.mubr.msk.bf16.vlgmr.msra.gmra.mrb[0].mxu0 %vm422_vm3, %v1669_v15 }
  0xd6   : > { %1077 = vmatpush1.bf16.msra.mxu0 %v1068_v16  ;;  %1108 = vmatprep.mubr.bf16.mxu0 %v1984_v6 }
  0xd7   : > { %1747 = vmatmul.mubr.msk.bf16.vlgmr.msra.gmra.mrb[0].mxu1 %vm422_vm3, %v1669_v15  ;;  %1678 = vmatprep.subr.msk.bf16.mxu0 %vm426_vm2, %v1172_v17 }
  0xd8   : > { %1751 = vmatpush3.bf16.msra.mxu1 %v1074_v18  ;;  %1752 = vmatprep.mubr.msk.bf16.mxu1 %vm1985_vm0, %v1983_v5 }
  0xd9   : > { %1756 = vmatprep.subr.bf16.mxu1 %v1983_v5 }
  0xe1   : > { %1675 = vmatmul.mubr.msk.bf16.vlgmr.msra.gmra.mrb[0].mxu0 %vm422_vm3, %v1673_v25 }
  0xe2   : > { %1187 = vmatpush1.bf16.msra.mxu0 %v1178_v26  ;;  %1218 = vmatprep.mubr.bf16.mxu0 %v1984_v6 }
  0xe3   : > { %1753 = vmatmul.mubr.msk.bf16.vlgmr.msra.gmra.mrb[0].mxu1 %vm422_vm3, %v1673_v25  ;;  %1682 = vmatprep.subr.msk.bf16.mxu0 %vm426_vm2, %v1282_v27 }
  0xe4   : > { %1757 = vmatpush3.bf16.msra.mxu1 %v1184_v28  ;;  %1758 = vmatprep.mubr.msk.bf16.mxu1 %vm1985_vm0, %v1983_v5 }
  0xe5   : > { %1762 = vmatprep.subr.bf16.mxu1 %v1983_v5 }
  0xed   : > { %1679 = vmatmul.mubr.msk.bf16.vlgmr.msra.gmra.mrb[0].mxu0 %vm422_vm3, %v1677_v32 }
  0xee   : > { %1297 = vmatpush1.bf16.msra.mxu0 %v1288_v33  ;;  %1328 = vmatprep.mubr.bf16.mxu0 %v1984_v6  ;;  %v1395_v6 = vld [vmem:[%s2323_s3] sm:$0x7] }
  0xef   : > { %1759 = vmatmul.mubr.msk.bf16.vlgmr.msra.gmra.mrb[0].mxu1 %vm422_vm3, %v1677_v32  ;;  %v1396_v36 = vunpack.c.l.bf16 %v1395_v6 }
  0xf0   : > { %1763 = vmatpush3.bf16.msra.mxu1 %v1294_v34  ;;  %1764 = vmatprep.mubr.msk.bf16.mxu1 %vm1985_vm0, %v1983_v5 }
  0xf1   : > { %v1401_v40 = vrot.slane %v1396_v36, %v1400_v37  ;;  %v1405_v41 = vrot.slane %v1396_v36, %v1404_v38  ;;  %v1409_v42 = vrot.slane %v1396_v36, %v1408_v39 }
  0xf3   : > { %v1416_v43 = vrot.slane %v1401_v40, %v1400_v37  ;;  %v1420_v44 = vrot.slane %v1405_v41, %v1400_v37  ;;  %v1424_v45 = vrot.slane %v1409_v42, %v1400_v37 }
  0xf9   : > { %1683 = vmatmul.mubr.msk.bf16.vlgmr.msra.gmra.mrb[0].mxu0 %vm422_vm3, %v1681_v35 }
  0xfb   : > { %1765 = vmatmul.mubr.msk.bf16.vlgmr.msra.gmra.mrb[0].mxu1 %vm422_vm3, %v1681_v35 }
 0x1cc   : > { %v1330_v46 = vpop.f32.mrb[0].mxu0 }
 0x1cd   : > { %v1425_v47 = vmul.f32 %v1416_v43, %v1330_v46  ;;  %v1332_v48 = vpop.f32.mrb[1].mxu0 }
 0x1ce   : > { %v1693_v49 = vpack.c.bf16 %v1332_v48, %v1330_v46  ;;  %v1426_v50 = vmul.f32 %v1420_v44, %v1332_v48  ;;  %v1334_v51 = vpop.f32.mrb[2].mxu0  ;;  %v1371_v52 = vpop.f32.mrb[0].mxu1 }
 0x1cf   : > { %v1444_v53 = vmul.f32 %v1425_v47, %v1330_v46  ;;  %v1694_v54 = vpack.c.bf16 %v1371_v52, %v1371_v52  ;;  %v1335_v55 = vpop.f32.mrb[3].mxu0  ;;  %v1766_v3 = vpop.f32.mrb[1].mxu1  ;;  %v1427_v56 = vmul.f32 %v1424_v45, %v1371_v52 }
 0x1d0   : > { %1393 = vst [vmem:[%s329_s14] sm:$0xff] %v1693_v49  ;;  %v1445_v57 = vmul.f32 %v1426_v50, %v1332_v48  ;;  %v1374_v58 = vpop.f32.mrb[2].mxu1  ;;  %v1436_v59 = vadd.f32 %v1426_v50, %v1425_v47 }
 0x1d1   : > { %1394 = vst [vmem:[%s329_s14 + $0x8] sm:$0xf] %v1694_v54  ;;  %v1767_v60 = vpop.f32.mrb[3].mxu1  ;;  %v1446_v61 = vmul.f32 %v1427_v56, %v1371_v52 }
 0x1d2   : > { %v1437_v62 = vadd.f32 %v1436_v59, %v1427_v56  ;;  %v1447_v63 = vadd.f32 %v1445_v57, %v1444_v53 }
 0x1d4   : > { %1438 = vadd.xlane.f32.xlu0 %v1437_v62  ;;  %v1448_v0 = vadd.f32 %v1447_v63, %v1446_v61 }
 0x1d6   : > { %1449 = vadd.xlane.f32.xlu1 %v1448_v0 }
 0x1d7   : > { %1915 = shalt.err (!%p1912_p5)
}
 0x1d8   : > { %s1916_s24 = scalar_lea.hbm %s2271_s30, 192  ;;  %s1920_s18 = scalar_lea.hbm %s2324_s4, 384 }
 0x1d9   : > { %p1917_p6 = scmp.ne.s32.totalorder %s2271_s30, %s1916_s24  ;;  %p1921_p10 = scmp.lt.u32.totalorder %s2271_s30, %s2324_s4 }
 0x1da   : > { %p1922_p11 = scmp.lt.u32.totalorder %s1920_s18, %s1916_s24  ;;  %p1924_p13 = scmp.lt.u32.totalorder %s1916_s24, %s2271_s30 }
 0x1db   : > { %p1918_p7 = pnand %p1917_p6, %p2070_p4 }
 0x1dc   : > { %p1923_p12 = por %p1922_p11, %p1921_p10 }
 0x1dd   : > { %p1919_p9 = pneg %p1918_p7 }
 0x1de   : > { %p1925_p0 = por %p1924_p13, %p1923_p12 }
 0x1e0   : > { %p1926_p1 = pnand %p1925_p0, %p1919_p9 }
 0x1e2   : > { %1929 = shalt.err (!%p1926_p1)
}
 0x1e3   : > { %1834 = dma.vmem_to_hbm [thread:$0]  (%p2070_p4), %s1479_s19, 192, %s2271_s30, %s1454_s8   ;;  %v1435_v5 = vld [vmem:[%s2244_s28] sm:$0xff] }
 0x1e4   : > { %v1443_v2 = vld [vmem:[%s2262_s17] sm:$0xff] }
 0x261   : > { %v1439_v1 = vpop.xlane.xlu0 %1438 }
 0x262   : > { %v1440_v4 = vadd.f32 %v1439_v1, %v1435_v5 }
 0x263   : > { %v1450_v7 = vpop.xlane.xlu1 %1449 }
 0x264   : > { %1442 = vst.msk [vmem:[%s2244_s28] sm:$0xff] %vm1432_vm11, %v1440_v4  ;;  %v1451_v8 = vadd.f32 %v1450_v7, %v1443_v2 }
 0x266   : > { %1452 = vst.msk [vmem:[%s2262_s17] sm:$0xff] %vm1432_vm11, %v1451_v8 }
 0x267 PF: > { %p1840_p2 = scmp.ge.s32.totalorder %s1980_s26, 2  ;;  %s1496_s7 = sand.u32 1, %s1960_s21  }
 0x268   : > { %s1497_s13 = scalar_lea.sflag [#allocation3], %s1496_s7 }
 0x269   : > { %p1837_p3 = pnand %p1840_p2, %p2077_p8 }
 0x26b   : > { %1955 = dma.done.wait (!%p1837_p3), %s1497_s13, 192  }
 0x26c   : > { %1957 = vsyncadd (!%p1837_p3), %s1497_s13, 4294967104  ;;  %s20_s26 = sadd.s32 1, %s1980_s26   ;;  %s2329_s21 = smov %s1964_s22 }
 0x26d   : > { %p17_p4 = scmp.ge.s32.totalorder %s20_s26, 4   ;;  %s2330_s22 = smov %s1968_s23 }
 0x26e   : > { %s2331_s23 = smov %s2083_s10  ;;  %s2332_s24 = smov %s1976_s25 }
 0x26f   : > { %s2333_s25 = smov %s2335_s29  ;;  %19 = sbr.rel (!%p17_p4) target bundleno = 4 (0x4), region = 113 }
 0x276   :  { %1516 = vsyncpa [#allocation3], 1 }
 0x277   :  { %1518 = vsyncpa [#allocation3 + $0x1], 1 }

</bundles_post_ra>
